<compile_context>
chip_gen: v7x
topology: tpu7x:2x2x1
jax: 0.10.0
libtpu: 0.0.40
codegen_flags: <defaults>
</compile_context>

<pallas_src>
import functools

import jax
import jax.numpy as jnp
from jax import lax
from jax.experimental import pallas as pl
from jax.experimental.pallas import tpu as pltpu


# Contract the last (feature) axis of both operands: result[i, j] = <a_i, b_j>.
# Used for scores = q . k^T without materializing k^T.
_CONTRACT_LAST = (((1,), (1,)), ((), ()))


def _kv_project_kernel(k_in_ref, v_in_ref, wk_ref, bk_ref, wv_ref, bv_ref,
                       k_out_ref, v_out_ref, *, mxu_dtype):
    # Both projections pushed to the MXU back-to-back; bias adds (VPU) after.
    k = jnp.dot(k_in_ref[...].astype(mxu_dtype), wk_ref[...],
                preferred_element_type=jnp.float32)
    v = jnp.dot(v_in_ref[...].astype(mxu_dtype), wv_ref[...],
                preferred_element_type=jnp.float32)
    k_out_ref[...] = (k + bk_ref[...]).astype(k_out_ref.dtype)
    v_out_ref[...] = (v + bv_ref[...]).astype(v_out_ref.dtype)


def _attention_kernel(q_in_ref, k_ref, v_ref, wq_ref, bq_ref, wfc_ref, bfc_ref,
                      out_ref, attn_ref, *, mxu_dtype):
    # q projection.  1/sqrt(d) is already folded into wq_ref / bq_ref, so no
    # per-score (tq, S) scaling pass is needed later.
    q = jnp.dot(q_in_ref[...].astype(mxu_dtype), wq_ref[...],
                preferred_element_type=jnp.float32) + bq_ref[...]

    # scores[i, j] = <q_i, k_j>; feature axes contracted directly (k^T never
    # materialized).  K/V arrive pre-projected and pre-cast to mxu_dtype.
    scores = lax.dot_general(q.astype(mxu_dtype), k_ref[...], _CONTRACT_LAST,
                             preferred_element_type=jnp.float32)
    # TODO(synk): `mask` path (scores.masked_fill(mask == 0, -inf)) not implemented.

    # Numerically stable, EXACT softmax (the returned attention_weights must
    # match PyTorch's F.softmax; the previous approx reciprocal failed tolerance).
    m = jnp.max(scores, axis=-1, keepdims=True)
    e = jnp.exp(scores - m)
    inv = 1.0 / jnp.sum(e, axis=-1, keepdims=True)   # (tq, 1) — cheap exact divide
    p = e * inv                                       # single (tq, S) VPU pass
    attn_ref[...] = p.astype(attn_ref.dtype)

    # attended = attn @ v ; out = attended @ W_fc^T + b_fc
    attended = jnp.dot(p.astype(mxu_dtype), v_ref[...],
                       preferred_element_type=jnp.float32)
    out = jnp.dot(attended.astype(mxu_dtype), wfc_ref[...],
                  preferred_element_type=jnp.float32) + bfc_ref[...]
    out_ref[...] = out.astype(out_ref.dtype)


def _choose_tile(total, tile):
    """Largest multiple-of-8 divisor of `total` that is <= `tile`.

    Never falls back to `total` for large non-divisible sizes (that would
    materialize a full (S, S) slab in one step and blow v7x's 64 MiB VMEM)."""
    if total <= tile:
        return total
    for t in range((tile // 8) * 8, 0, -8):
        if total % t == 0:
            return t
    # TODO(synk): masked ragged last tile for S not a multiple of 8.
    return total


def attention_layer(query, key, value, params, *,
                    q_tile=256, kv_tile=512,
                    mxu_dtype=jnp.float32, attn_dtype=jnp.float32):
    """AttentionLayer forward for 2-D (seq, features) inputs.

    params: PyTorch nn.Linear layout — W_* of shape (out, in), b_* of shape (out,).
    Returns (output (S, D) f32, attention_weights (S, S) attn_dtype).

    Production knobs: mxu_dtype=jnp.bfloat16 on v6e/v7x (all matmuls at bf16 MXU
    rate, f32 accumulation); attn_dtype=jnp.bfloat16 on v5e / small-D regimes
    where the dense (S, S) attention writeback dominates HBM traffic.
    """
    S, D = query.shape
    f32 = jnp.float32
    scale = 1.0 / (float(D) ** 0.5)

    # One-time host-side weight prep (outside the grid loop — free):
    #  * transpose PyTorch (out, in) -> (in, out): kernels then issue plain NN
    #    matmuls, so there is no per-step RHS transpose risk on v5e's XLU.
    #  * fold the 1/sqrt(d) score scale into W_q / b_q.
    #  * cast weights to the MXU compute dtype once (not per grid step).
    wq_t = (params["W_q"].T * scale).astype(mxu_dtype)
    wk_t = params["W_k"].T.astype(mxu_dtype)
    wv_t = params["W_v"].T.astype(mxu_dtype)
    wfc_t = params["W_fc"].T.astype(mxu_dtype)
    bq = (params["b_q"] * scale).reshape(1, D).astype(f32)
    bk = params["b_k"].reshape(1, D).astype(f32)
    bv = params["b_v"].reshape(1, D).astype(f32)
    bfc = params["b_fc"].reshape(1, D).astype(f32)

    def const_spec(shape):
        # Blocks whose index never changes across the grid: single-buffer them
        # (double-buffering a constant block only wastes VMEM).
        return pl.BlockSpec(shape, lambda i: (0,) * len(shape),
                            pipeline_mode=pl.Buffered(1))

    # ---- Stage 1: one-shot K/V projection (hoisted out of the q-tile loop) ----
    tkv = _choose_tile(S, kv_tile)
    k_proj, v_proj = pl.pallas_call(
        functools.partial(_kv_project_kernel, mxu_dtype=mxu_dtype),
        out_shape=(jax.ShapeDtypeStruct((S, D), mxu_dtype),
                   jax.ShapeDtypeStruct((S, D), mxu_dtype)),
        grid=(S // tkv,),
        in_specs=[
            pl.BlockSpec((tkv, D), lambda i: (i, 0)),   # key rows
            pl.BlockSpec((tkv, D), lambda i: (i, 0)),   # value rows
            const_spec((D, D)), const_spec((1, D)),     # W_k^T, b_k
            const_spec((D, D)), const_spec((1, D)),     # W_v^T, b_v
        ],
        out_specs=(pl.BlockSpec((tkv, D), lambda i: (i, 0)),
                   pl.BlockSpec((tkv, D), lambda i: (i, 0))),
        compiler_params=pltpu.CompilerParams(
            dimension_semantics=("parallel",)),
    )(key, value, wk_t, bk, wv_t, bv)

    # ---- Stage 2: q-tiled attention -------------------------------------------
    tq = _choose_tile(S, q_tile)
    grid = (S // tq,)

    # Per-step VMEM footprint -> explicit scoped-VMEM limit (defaults are
    # 16 MiB v5e / 32 MiB v6e,v7x and too small at production S, D).
    mxu_bytes = jnp.dtype(mxu_dtype).itemsize
    attn_bytes = jnp.dtype(attn_dtype).itemsize
    per_step = (
        2 * tq * D * 4              # query block (double-buffered, f32)
        + 2 * tq * D * 4            # output block (double-buffered, f32)
        + 2 * tq * S * attn_bytes   # attention block (double-buffered)
        + 2 * S * D * mxu_bytes     # resident K, V (single-buffered)
        + 2 * D * D * mxu_bytes     # W_q^T, W_fc^T (single-buffered)
        + 2 * D * 4                 # biases
        + 3 * tq * S * 4            # scores / e / p f32 intermediates
        + 3 * tq * D * 4            # q / attended / out f32 intermediates
    )
    vmem_limit = int(min(max(2 * per_step, 32 << 20), 64 << 20))

    flops = 4 * S * D * D + 4 * S * S * D          # q-proj + fc + scores + attend
    bytes_accessed = (S * D * 4                    # query
                      + 2 * S * D * mxu_bytes      # k_proj, v_proj
                      + 2 * D * D * mxu_bytes + 2 * D * 4
                      + S * D * 4                  # output
                      + S * S * attn_bytes)        # attention_weights
    cost = pl.CostEstimate(flops=flops, transcendentals=S * S,
                           bytes_accessed=bytes_accessed)

    out, attn = pl.pallas_call(
        functools.partial(_attention_kernel, mxu_dtype=mxu_dtype),
        out_shape=(jax.ShapeDtypeStruct((S, D), f32),          # output
                   jax.ShapeDtypeStruct((S, S), attn_dtype)),  # attention_weights
        grid=grid,
        in_specs=[
            pl.BlockSpec((tq, D), lambda i: (i, 0)),   # query (tiled over the grid)
            const_spec((S, D)),                        # k_proj (resident)
            const_spec((S, D)),                        # v_proj (resident)
            const_spec((D, D)), const_spec((1, D)),    # W_q^T (pre-scaled), b_q
            const_spec((D, D)), const_spec((1, D)),    # W_fc^T, b_fc
        ],
        out_specs=(pl.BlockSpec((tq, D), lambda i: (i, 0)),
                   pl.BlockSpec((tq, S), lambda i: (i, 0))),
        compiler_params=pltpu.CompilerParams(
            dimension_semantics=("parallel",),         # both v7x TCs work when grid >= 2
            vmem_limit_bytes=vmem_limit),
        cost_estimate=cost,
    )(query, k_proj, v_proj, wq_t, bq, wfc_t, bfc)
    return out, attn


def _reference(query, key, value, params):
    hi = lax.Precision.HIGHEST

    def linear(x, w, b):
        return jnp.dot(x, w.T, precision=hi) + b

    q = linear(query, params["W_q"], params["b_q"])
    k = linear(key, params["W_k"], params["b_k"])
    v = linear(value, params["W_v"], params["b_v"])
    scores = jnp.dot(q, k.T, precision=hi) / (q.shape[-1] ** 0.5)
    attn = jax.nn.softmax(scores, axis=-1)
    attended = jnp.dot(attn, v, precision=hi)
    out = linear(attended, params["W_fc"], params["b_fc"])
    return out, attn


if __name__ == "__main__":
    S, D = 8, 32   # seq = 8, input_size (hidden) = 32
    key0 = jax.random.PRNGKey(0)
    keys = jax.random.split(key0, 11)

    # Deterministic synthetic parameters (PyTorch Linear shapes: (out, in), (out,)).
    bound = 1.0 / (D ** 0.5)
    params = {
        "W_q":  jax.random.uniform(keys[0], (D, D), jnp.float32, -bound, bound),
        "b_q":  jax.random.uniform(keys[1], (D,),   jnp.float32, -bound, bound),
        "W_k":  jax.random.uniform(keys[2], (D, D), jnp.float32, -bound, bound),
        "b_k":  jax.random.uniform(keys[3], (D,),   jnp.float32, -bound, bound),
        "W_v":  jax.random.uniform(keys[4], (D, D), jnp.float32, -bound, bound),
        "b_v":  jax.random.uniform(keys[5], (D,),   jnp.float32, -bound, bound),
        "W_fc": jax.random.uniform(keys[6], (D, D), jnp.float32, -bound, bound),
        "b_fc": jax.random.uniform(keys[7], (D,),   jnp.float32, -bound, bound),
    }

    query = jax.random.normal(keys[8],  (S, D), jnp.float32)
    key_x = jax.random.normal(keys[9],  (S, D), jnp.float32)
    value = jax.random.normal(keys[10], (S, D), jnp.float32)

    out, attn = attention_layer(query, key_x, value, params)
    out = jax.block_until_ready(out)
    attn = jax.block_until_ready(attn)

    ref_out, ref_attn = _reference(query, key_x, value, params)
    assert out.shape == (S, D) and attn.shape == (S, S)
    assert jnp.allclose(out, ref_out, atol=1e-3, rtol=1e-3)
    assert jnp.allclose(attn, ref_attn, atol=1e-3, rtol=1e-3)
    # Exact softmax: rows must sum to 1.
    assert jnp.allclose(jnp.sum(attn, axis=-1), 1.0, atol=1e-5)

    print("KERNEL_OK")
</pallas_src>

<mosaic_0001>
module attributes {stable_mosaic.version = 11 : i64} {
  func.func @_kv_project_kernel(%arg0: i32, %arg1: memref<8x32xf32, #tpu.memory_space<vmem>>, %arg2: memref<8x32xf32, #tpu.memory_space<vmem>>, %arg3: memref<32x32xf32, #tpu.memory_space<vmem>>, %arg4: memref<1x32xf32, #tpu.memory_space<vmem>>, %arg5: memref<32x32xf32, #tpu.memory_space<vmem>>, %arg6: memref<1x32xf32, #tpu.memory_space<vmem>>, %arg7: memref<8x32xf32, #tpu.memory_space<vmem>>, %arg8: memref<8x32xf32, #tpu.memory_space<vmem>>) attributes {dimension_semantics = [#tpu.dimension_semantics<parallel>], iteration_bounds = array<i64: 1>, scalar_prefetch = 0 : i64, scratch_operands = 0 : i64, tpu.core_type = #tpu.core_type<tc>, window_params = [{transform_indices = @transform_0, window_bounds = array<i64: 8, 32>}, {transform_indices = @transform_1, window_bounds = array<i64: 8, 32>}, {pipeline_mode = #tpu.pipeline_mode<synchronous>, transform_indices = @transform_2, window_bounds = array<i64: 32, 32>}, {pipeline_mode = #tpu.pipeline_mode<synchronous>, transform_indices = @transform_3, window_bounds = array<i64: 1, 32>}, {pipeline_mode = #tpu.pipeline_mode<synchronous>, transform_indices = @transform_4, window_bounds = array<i64: 32, 32>}, {pipeline_mode = #tpu.pipeline_mode<synchronous>, transform_indices = @transform_5, window_bounds = array<i64: 1, 32>}, {transform_indices = @transform_6, window_bounds = array<i64: 8, 32>}, {transform_indices = @transform_7, window_bounds = array<i64: 8, 32>}]} {
    %c0 = arith.constant 0 : index
    %c0_0 = arith.constant 0 : index
    %0 = vector.load %arg1[%c0, %c0_0] : memref<8x32xf32, #tpu.memory_space<vmem>>, vector<8x32xf32>
    %c0_1 = arith.constant 0 : index
    %c0_2 = arith.constant 0 : index
    %1 = vector.load %arg3[%c0_1, %c0_2] : memref<32x32xf32, #tpu.memory_space<vmem>>, vector<32x32xf32>
    %cst = arith.constant dense<0.000000e+00> : vector<8x32xf32>
    %2 = tpu.matmul %0, %1, %cst {dimension_numbers = #tpu.dot_dimension_numbers<[1], [0], [0], [1], [0, 0, 1, 1], [], []>} : vector<8x32xf32>, vector<32x32xf32>, vector<8x32xf32> -> vector<8x32xf32>
    %c0_3 = arith.constant 0 : index
    %c0_4 = arith.constant 0 : index
    %3 = vector.load %arg2[%c0_3, %c0_4] : memref<8x32xf32, #tpu.memory_space<vmem>>, vector<8x32xf32>
    %c0_5 = arith.constant 0 : index
    %c0_6 = arith.constant 0 : index
    %4 = vector.load %arg5[%c0_5, %c0_6] : memref<32x32xf32, #tpu.memory_space<vmem>>, vector<32x32xf32>
    %cst_7 = arith.constant dense<0.000000e+00> : vector<8x32xf32>
    %5 = tpu.matmul %3, %4, %cst_7 {dimension_numbers = #tpu.dot_dimension_numbers<[1], [0], [0], [1], [0, 0, 1, 1], [], []>} : vector<8x32xf32>, vector<32x32xf32>, vector<8x32xf32> -> vector<8x32xf32>
    %c0_8 = arith.constant 0 : index
    %c0_9 = arith.constant 0 : index
    %6 = vector.load %arg4[%c0_8, %c0_9] : memref<1x32xf32, #tpu.memory_space<vmem>>, vector<1x32xf32>
    %7 = vector.broadcast %6 : vector<1x32xf32> to vector<8x32xf32>
    %8 = arith.addf %2, %7 : vector<8x32xf32>
    %c0_10 = arith.constant 0 : index
    %c0_11 = arith.constant 0 : index
    %9 = vector.load %arg7[%c0_10, %c0_11] : memref<8x32xf32, #tpu.memory_space<vmem>>, vector<8x32xf32>
    tpu.vector_store %arg7[%c0_10, %c0_11], %8 {strides = array<i32>} : memref<8x32xf32, #tpu.memory_space<vmem>>, vector<8x32xf32>,
    %c0_12 = arith.constant 0 : index
    %c0_13 = arith.constant 0 : index
    %10 = vector.load %arg6[%c0_12, %c0_13] : memref<1x32xf32, #tpu.memory_space<vmem>>, vector<1x32xf32>
    %11 = vector.broadcast %10 : vector<1x32xf32> to vector<8x32xf32>
    %12 = arith.addf %5, %11 : vector<8x32xf32>
    %c0_14 = arith.constant 0 : index
    %c0_15 = arith.constant 0 : index
    %13 = vector.load %arg8[%c0_14, %c0_15] : memref<8x32xf32, #tpu.memory_space<vmem>>, vector<8x32xf32>
    tpu.vector_store %arg8[%c0_14, %c0_15], %12 {strides = array<i32>} : memref<8x32xf32, #tpu.memory_space<vmem>>, vector<8x32xf32>,
    return
  }
  func.func @transform_0(%arg0: i32) -> (i32, i32) {
    %c0_i32 = arith.constant 0 : i32
    %c0_i32_0 = arith.constant 0 : i32
    return %arg0, %c0_i32 : i32, i32
  }
  func.func @transform_1(%arg0: i32) -> (i32, i32) {
    %c0_i32 = arith.constant 0 : i32
    %c0_i32_0 = arith.constant 0 : i32
    return %arg0, %c0_i32 : i32, i32
  }
  func.func @transform_2(%arg0: i32) -> (i32, i32) {
    %c0_i32 = arith.constant 0 : i32
    %c0_i32_0 = arith.constant 0 : i32
    %c0_i32_1 = arith.constant 0 : i32
    return %c0_i32, %c0_i32_0 : i32, i32
  }
  func.func @transform_3(%arg0: i32) -> (i32, i32) {
    %c0_i32 = arith.constant 0 : i32
    %c0_i32_0 = arith.constant 0 : i32
    %c0_i32_1 = arith.constant 0 : i32
    return %c0_i32, %c0_i32_0 : i32, i32
  }
  func.func @transform_4(%arg0: i32) -> (i32, i32) {
    %c0_i32 = arith.constant 0 : i32
    %c0_i32_0 = arith.constant 0 : i32
    %c0_i32_1 = arith.constant 0 : i32
    return %c0_i32, %c0_i32_0 : i32, i32
  }
  func.func @transform_5(%arg0: i32) -> (i32, i32) {
    %c0_i32 = arith.constant 0 : i32
    %c0_i32_0 = arith.constant 0 : i32
    %c0_i32_1 = arith.constant 0 : i32
    return %c0_i32, %c0_i32_0 : i32, i32
  }
  func.func @transform_6(%arg0: i32) -> (i32, i32) {
    %c0_i32 = arith.constant 0 : i32
    %c0_i32_0 = arith.constant 0 : i32
    return %arg0, %c0_i32 : i32, i32
  }
  func.func @transform_7(%arg0: i32) -> (i32, i32) {
    %c0_i32 = arith.constant 0 : i32
    %c0_i32_0 = arith.constant 0 : i32
    return %arg0, %c0_i32 : i32, i32
  }
}

</mosaic_0001>

<bundles_post_ra>
// kernel: tpu_custom_call.1
= control target key start
LH: loop header
LB: loop body
LE: loop exit
PB: predicated region body
PF: predicated region fallthrough
CT: control target
= control target key end

     0   :  { %13 = vsyncpa [#allocation3], 0  ;;  %s616_s0 = inlined_call_operand.hbm [shape: f32[8,32], index: 0, kind: input, shape index: {}]   ;;  %s617_s1 = inlined_call_operand.hbm [shape: f32[8,32], index: 1, kind: input, shape index: {}]   ;;  %s618_s2 = inlined_call_operand.hbm [shape: f32[32,32], index: 2, kind: input, shape index: {}]   ;;  %s619_s3 = inlined_call_operand.vmem [shape: f32[1,32], index: 3, kind: input, shape index: {}]   ;;  %s620_s4 = inlined_call_operand.hbm [shape: f32[32,32], index: 4, kind: input, shape index: {}]   ;;  %s621_s5 = inlined_call_operand.vmem [shape: f32[1,32], index: 5, kind: input, shape index: {}]   ;;  %s622_s6 = inlined_call_operand.hbm [shape: f32[8,32], index: 6, kind: output, shape index: {0}]   ;;  %s623_s7 = inlined_call_operand.hbm [shape: f32[8,32], index: 7, kind: output, shape index: {1}]  }
   0x1   :  { %14 = vsyncpa [#allocation6], 0 }
   0x2   :  { %15 = vsyncpa [#allocation9], 0 }
   0x3   :  { %16 = vsyncpa [#allocation4], 0 }
   0x4   :  { %17 = vsyncpa [#allocation12], 0  ;;  %s483_s24 = smov [#allocation5]   ;;  %s484_s26 = smov [#allocation2]  }
   0x5   :  { %s34_s25 = sshll.u32 %s483_s24, 4  ;;  %s24_s27 = sshll.u32 %s484_s26, 4  ;;  %s35_s25 = int_to_ptr.vmem [resolvable:$true] %s34_s25  ;;  %s25_s27 = int_to_ptr.vmem [resolvable:$true] %s24_s27 }
   0x6   :  { %s341_s30 = scalar_lea.hbm %s617_s1, 128 }
   0x7   :  { %p342_p0 = scmp.ne.s32.totalorder %s617_s1, %s341_s30  ;;  %p345_p1 = scmp.lt.u32.totalorder %s341_s30, %s617_s1 }
   0x9   :  { %p347_p2 = pnand %p345_p1, %p342_p0 }
   0xb   :  { %350 = shalt.err (!%p347_p2)
}
   0xc   :  { %s351_s12 = scalar_lea.vmem %s35_s25, 128  ;;  %p356_p4 = scmp.lt.s32.totalorder %s35_s25, %s35_s25 }
   0xd   :  { %p352_p3 = scmp.ne.s32.totalorder %s35_s25, %s351_s12  ;;  %p357_p5 = scmp.lt.s32.totalorder %s351_s12, %s351_s12 }
   0xf   :  { %p358_p6 = por %p357_p5, %p356_p4 }
  0x11   :  { %p359_p7 = pnand %p358_p6, %p352_p3 }
  0x13   :  { %362 = shalt.err (!%p359_p7)
}
  0x14   :  { %37 = dma.hbm_to_vmem [thread:$0]  %s617_s1, 128, %s35_s25, [#allocation6]  }
  0x15   :  { %s363_s17 = scalar_lea.hbm %s616_s0, 128 }
  0x16   :  { %p364_p8 = scmp.ne.s32.totalorder %s616_s0, %s363_s17  ;;  %p367_p9 = scmp.lt.u32.totalorder %s363_s17, %s616_s0 }
  0x18   :  { %p369_p10 = pnand %p367_p9, %p364_p8 }
  0x1a   :  { %372 = shalt.err (!%p369_p10)
}
  0x1b   :  { %s373_s22 = scalar_lea.vmem %s25_s27, 128  ;;  %p378_p12 = scmp.lt.s32.totalorder %s25_s27, %s25_s27 }
  0x1c   :  { %p374_p11 = scmp.ne.s32.totalorder %s25_s27, %s373_s22  ;;  %p379_p13 = scmp.lt.s32.totalorder %s373_s22, %s373_s22 }
  0x1e   :  { %p380_p0 = por %p379_p13, %p378_p12 }
  0x20   :  { %p381_p1 = pnand %p380_p0, %p374_p11 }
  0x22   :  { %384 = shalt.err (!%p381_p1)
}
  0x23   :  { %27 = dma.hbm_to_vmem [thread:$0]  %s616_s0, 128, %s25_s27, [#allocation3]  }
  0x24   :  { %s485_s24 = smov [#allocation7]   ;;  %s385_s29 = scalar_lea.hbm %s618_s2, 512 }
  0x25   :  { %s43_s25 = sshll.u32 %s485_s24, 4  ;;  %p386_p2 = scmp.ne.s32.totalorder %s618_s2, %s385_s29  ;;  %s44_s25 = int_to_ptr.vmem [resolvable:$true] %s43_s25 }
  0x26   :  { %p389_p3 = scmp.lt.u32.totalorder %s385_s29, %s618_s2 }
  0x28   :  { %p391_p4 = pnand %p389_p3, %p386_p2 }
  0x2a   :  { %394 = shalt.err (!%p391_p4)
}
  0x2b   :  { %s395_s11 = scalar_lea.vmem %s44_s25, 512  ;;  %p400_p6 = scmp.lt.s32.totalorder %s44_s25, %s44_s25 }
  0x2c   :  { %p396_p5 = scmp.ne.s32.totalorder %s44_s25, %s395_s11  ;;  %p401_p7 = scmp.lt.s32.totalorder %s395_s11, %s395_s11 }
  0x2e   :  { %p402_p8 = por %p401_p7, %p400_p6 }
  0x30   :  { %p403_p9 = pnand %p402_p8, %p396_p5 }
  0x32   :  { %406 = shalt.err (!%p403_p9)
}
  0x33   :  { %s486_s0 = smov 128   ;;  %s487_s27 = smov 8  }
  0x34   :  { %49 = dma.hbm_to_vmem [thread:$0]  %s618_s2, 512, %s44_s25, [#allocation6], %s486_s0, %s486_s0, %s487_s27  }
  0x35   :  { %s488_s14 = smov [#allocation8]   ;;  %s407_s18 = scalar_lea.hbm %s620_s4, 512 }
  0x36   :  { %s57_s15 = sshll.u32 %s488_s14, 4  ;;  %p408_p10 = scmp.ne.s32.totalorder %s620_s4, %s407_s18  ;;  %s58_s15 = int_to_ptr.vmem [resolvable:$true] %s57_s15 }
  0x37   :  { %p411_p11 = scmp.lt.u32.totalorder %s407_s18, %s620_s4 }
  0x39   :  { %p413_p12 = pnand %p411_p11, %p408_p10 }
  0x3b   :  { %416 = shalt.err (!%p413_p12)
}
  0x3c   :  { %s417_s1 = scalar_lea.vmem %s58_s15, 512  ;;  %p422_p0 = scmp.lt.s32.totalorder %s58_s15, %s58_s15 }
  0x3d   :  { %p418_p13 = scmp.ne.s32.totalorder %s58_s15, %s417_s1  ;;  %p423_p1 = scmp.lt.s32.totalorder %s417_s1, %s417_s1 }
  0x3f   :  { %p424_p2 = por %p423_p1, %p422_p0 }
  0x41   :  { %p425_p3 = pnand %p424_p2, %p418_p13 }
  0x43   :  { %428 = shalt.err (!%p425_p3)
}
  0x44   :  { %63 = dma.hbm_to_vmem [thread:$0]  %s620_s4, 512, %s58_s15, [#allocation9], %s486_s0, %s486_s0, %s487_s27  }
  0x45   :  { %473 = dma.done.wait [#allocation3], 128  }
  0x46   :  { %474 = vsyncadd [#allocation3], 4294967168 }
  0x47   :  { %475 = dma.done.wait [#allocation6], 640  }
  0x48   :  { %476 = vsyncadd [#allocation6], 4294966656 }
  0x49   :  { %477 = dma.done.wait [#allocation9], 512  }
  0x4a   :  { %478 = vsyncadd [#allocation9], 4294966784  ;;  %v489_v0 = vmov 0.0|0.0   ;;  %vm490_vm0 = vmmov 0   ;;  %v491_v1 = vmov 0.0   ;;  %v79_v2 = vld [vmem:[#allocation7] sm:$0xff] }
  0x4b   :  { %318 = vmatprep.subr.bf16.mxu0 %v489_v0  ;;  %324 = vmatprep.subr.bf16.mxu1 %v489_v0  ;;  %v80_v3 = vld [vmem:[#allocation7 + $0x8] sm:$0xff]  ;;  %v84_v4 = vld [vmem:[#allocation8] sm:$0xff]  ;;  %v81_v7 = vld [vmem:[#allocation7 + $0x10] sm:$0xff]  ;;  %vm95_vm1 = vcmask 261120   ;;  %s492_s25 = smov [#allocation10]   ;;  %s493_s30 = smov [#allocation11]  }
  0x4c   :  { %304 = vmatprep.mubr.msk.f32.mxu0 %vm490_vm0, %v491_v1  ;;  %315 = vmatprep.mubr.msk.f32.mxu1 %vm490_vm0, %v491_v1  ;;  %v319_v5 = vpack.c.bf16 %v80_v3, %v79_v2  ;;  %v85_v6 = vld [vmem:[#allocation8 + $0x8] sm:$0xff]  ;;  %v82_v8 = vld [vmem:[#allocation7 + $0x18] sm:$0xff]  ;;  %v86_v10 = vld [vmem:[#allocation8 + $0x10] sm:$0xff]  ;;  %s257_s26 = sshll.u32 %s492_s25, 4  ;;  %s267_s8 = sshll.u32 %s493_s30, 4  ;;  %s258_s26 = int_to_ptr.vmem [resolvable:$true] %s257_s26  ;;  %s268_s8 = int_to_ptr.vmem [resolvable:$true] %s267_s8 }
  0x4d   :  { %v325_v9 = vpack.c.bf16 %v85_v6, %v84_v4  ;;  %v87_v11 = vld [vmem:[#allocation8 + $0x18] sm:$0xff]  ;;  %v322_v12 = vpack.c.bf16 %v82_v8, %v81_v7  ;;  %v78_v14 = vld [vmem:[#allocation2] sm:$0xff]  ;;  %p434_p5 = scmp.lt.s32.totalorder %s258_s26, %s258_s26 }
  0x4e   :  { %320 = vmatpush3.bf16.msra.mxu0 %v319_v5  ;;  %v328_v13 = vpack.c.bf16 %v87_v11, %v86_v10  ;;  %v83_v15 = vld [vmem:[#allocation5] sm:$0xff]  ;;  %v282_v16 = vld [vmem:[%s619_s3] ss:$0 sm:$0xff]  ;;  %s429_s3 = scalar_lea.vmem %s258_s26, 128 }
  0x4f   :  { %326 = vmatpush3.bf16.msra.mxu1 %v325_v9  ;;  %321 = vmatprep.subr.bf16.mxu0 %v489_v0  ;;  %v284_v17 = vld [vmem:[%s621_s5] ss:$0 sm:$0xff]  ;;  %p430_p4 = scmp.ne.s32.totalorder %s258_s26, %s429_s3  ;;  %p435_p6 = scmp.lt.s32.totalorder %s429_s3, %s429_s3 }
  0x50   :  { %327 = vmatprep.subr.bf16.mxu1 %v489_v0 }
  0x51   :  { %p436_p7 = por %p435_p6, %p434_p5 }
  0x52   :  { %323 = vmatpush3.bf16.msra.mxu0 %v322_v12 }
  0x53   :  { %329 = vmatpush3.bf16.msra.mxu1 %v328_v13  ;;  %p437_p8 = pnand %p436_p7, %p430_p4 }
  0x55   :  { %305 = vmatmul.mubr.msk.f32.vlgmr.msra.gmra.mrb[0].mxu0 %vm95_vm1, %v78_v14 }
  0x56   :  { %316 = vmatmul.mubr.msk.f32.vlgmr.msra.gmra.mrb[0].mxu1 %vm95_vm1, %v83_v15 }
 0x128   :  { %v165_v18 = vpop.f32.mrb[0].mxu0 }
 0x129   :  { %v166_v19 = vadd.f32 %v282_v16, %v165_v18  ;;  %v246_v20 = vpop.f32.mrb[0].mxu1  ;;  %v306_v21 = vpop.f32.mrb[1].mxu0 }
 0x12a   :  { %v247_v22 = vadd.f32 %v284_v17, %v246_v20  ;;  %v317_v23 = vpop.f32.mrb[1].mxu1 }
 0x12b   :  { %169 = vst.msk [vmem:[#allocation10] sm:$0xff] %vm95_vm1, %v166_v19 }
 0x12c   :  { %250 = vst.msk [vmem:[#allocation11] sm:$0xff] %vm95_vm1, %v247_v22 }
 0x12d   :  { %440 = shalt.err (!%p437_p8)
}
 0x12e   :  { %s441_s10 = scalar_lea.hbm %s622_s6, 128 }
 0x12f   :  { %p442_p9 = scmp.ne.s32.totalorder %s622_s6, %s441_s10  ;;  %p445_p10 = scmp.lt.u32.totalorder %s441_s10, %s622_s6 }
 0x131   :  { %p447_p11 = pnand %p445_p10, %p442_p9 }
 0x133   :  { %450 = shalt.err (!%p447_p11)
}
 0x134   :  { %260 = dma.vmem_to_hbm [thread:$0]  %s258_s26, 128, %s622_s6, [#allocation4]  }
 0x135   :  { %s451_s15 = scalar_lea.vmem %s268_s8, 128  ;;  %p456_p13 = scmp.lt.s32.totalorder %s268_s8, %s268_s8 }
 0x136   :  { %p452_p12 = scmp.ne.s32.totalorder %s268_s8, %s451_s15  ;;  %p457_p0 = scmp.lt.s32.totalorder %s451_s15, %s451_s15 }
 0x138   :  { %p458_p1 = por %p457_p0, %p456_p13 }
 0x13a   :  { %p459_p2 = pnand %p458_p1, %p452_p12 }
 0x13c   :  { %462 = shalt.err (!%p459_p2)
}
 0x13d   :  { %s463_s18 = scalar_lea.hbm %s623_s7, 128 }
 0x13e   :  { %p464_p3 = scmp.ne.s32.totalorder %s623_s7, %s463_s18  ;;  %p467_p4 = scmp.lt.u32.totalorder %s463_s18, %s623_s7 }
 0x140   :  { %p469_p5 = pnand %p467_p4, %p464_p3 }
 0x142   :  { %472 = shalt.err (!%p469_p5)
}
 0x143   :  { %270 = dma.vmem_to_hbm [thread:$0]  %s268_s8, 128, %s623_s7, [#allocation12]  }
 0x144   :  { %479 = dma.done.wait [#allocation4], 128  }
 0x145   :  { %480 = vsyncadd [#allocation4], 4294967168 }
 0x146   :  { %481 = dma.done.wait [#allocation12], 128  }
 0x147   :  { %482 = vsyncadd [#allocation12], 4294967168 }
 0x148   :  { %277 = vsyncpa [#allocation3], 1 }
 0x149   :  { %278 = vsyncpa [#allocation6], 1 }
 0x14a   :  { %279 = vsyncpa [#allocation9], 1 }
 0x14b   :  { %280 = vsyncpa [#allocation4], 1 }
 0x14c   :  { %281 = vsyncpa [#allocation12], 1 }

</bundles_post_ra>
